<compile_context>
chip_gen: v7x
topology: tpu7x:2x2x1
jax: 0.10.0
libtpu: 0.0.40
codegen_flags: <defaults>
</compile_context>

<pallas_src>
import functools
import math

import jax
import jax.numpy as jnp
from jax.experimental import pallas as pl
from jax.experimental.pallas import tpu as pltpu


def _round_up(x, m):
    return (x + m - 1) // m * m


def _pool_kernel(x_ref, o_ref, *, hw_true, thw, need_mask):
    """Spatial mean over the last axis of a (TB, TC, THW) activation tile.

    o_ref (TB, TC) f32 is the resident accumulator (same output block for all
    hw steps): zeroed at hw == 0, holds the mean after the last hw step.
    """
    hw = pl.program_id(2)
    last = pl.num_programs(2) - 1

    @pl.when(hw == 0)
    def _():
        o_ref[...] = jnp.zeros_like(o_ref)

    def accumulate(masked):
        x = x_ref[...].astype(jnp.float32)                    # (TB, TC, THW)
        if masked:
            # (1, 1, THW) iota broadcasts against x; out-of-range lanes -> 0.
            lane = jax.lax.broadcasted_iota(jnp.int32, (1, 1, thw), 2)
            x = jnp.where(hw * thw + lane < hw_true, x, 0.0)
        o_ref[...] += jnp.sum(x, axis=-1)                     # (TB, TC)

    if need_mask:
        # Mask only on the last spatial tile; hot loop stays cast + add.
        @pl.when(hw < last)
        def _():
            accumulate(False)

        @pl.when(hw == last)
        def _():
            accumulate(True)
            o_ref[...] *= jnp.float32(1.0 / hw_true)
    else:
        accumulate(False)

        @pl.when(hw == last)
        def _():
            o_ref[...] *= jnp.float32(1.0 / hw_true)


def _fc_kernel(p_ref, w1t_ref, b1_ref, w2t_ref, b2_ref, o_ref):
    """sigmoid(relu(p @ w1t + b1) @ w2t + b2) on the pooled (B, C) means."""
    h = jnp.dot(p_ref[...], w1t_ref[...], preferred_element_type=jnp.float32)
    h = jnp.maximum(h + b1_ref[...], 0.0)                     # ReLU
    y = jnp.dot(h, w2t_ref[...], preferred_element_type=jnp.float32)
    o_ref[...] = jax.nn.sigmoid(y + b2_ref[...]).astype(o_ref.dtype)


def _choose_tiles(B, C, HW, esize, target_tile_bytes):
    """Pick (B_pad, TB, TC, THW) for the pooling kernel."""
    # Batch tile: the (TB, TC) output block needs TB % 8 == 0 or TB == B; pad
    # awkward batches (> 8, not a multiple of 8) up to a multiple of 8.
    if B <= 8:
        B_pad, TB = B, B
    else:
        B_pad = _round_up(B, 8)
        TB = 8

    THW_full = _round_up(HW, 128)
    # Each block DMA is TB*TC strided row segments of THW*esize bytes; keep
    # segments >= ~2 KiB when the spatial extent allows.
    thw_floor = min(THW_full, _round_up(max(128, 2048 // esize), 128))

    can_tile_c = (C % 128 == 0) and (C > 128)
    tc0 = 128 if can_tile_c else C

    max_thw = max(thw_floor,
                  (target_tile_bytes // (TB * tc0 * esize)) // 128 * 128)
    THW = int(min(THW_full, max_thw))

    if not can_tile_c:
        return B_pad, TB, C, THW

    # Channel tile: a multiple of 128 that divides C, as large as the byte
    # budget allows; keep >= 2 channel tiles when there is only one batch tile
    # so both v7x TensorCores get work (megacore).
    max_tc = max(128, (target_tile_bytes // (TB * THW * esize)) // 128 * 128)
    cap = C // 2 if (B_pad == TB) else C
    best = 128
    for d in range(128, C + 1, 128):
        if C % d == 0 and d <= max_tc and d <= cap:
            best = d
    return B_pad, TB, best, THW


def se_weight_forward(x_nchw, w1, b1, w2, b2, *,
                      target_tile_bytes=8 * 1024 * 1024):
    """x_nchw: (B, C, H, W); w1: (C//r, C); b1: (C//r,); w2: (C, C//r); b2: (C,).
    Returns sigmoid channel weights of shape (B, C, 1, 1) (matches PyTorch)."""
    B, C, H, W = x_nchw.shape
    Cr = w1.shape[0]
    assert w1.shape == (Cr, C) and w2.shape == (C, Cr)
    assert b1.shape == (Cr,) and b2.shape == (C,)
    HW = H * W
    esize = jnp.dtype(x_nchw.dtype).itemsize

    B_pad, TB, TC, THW = _choose_tiles(B, C, HW, esize, target_tile_bytes)
    n_b = B_pad // TB
    n_c = pl.cdiv(C, TC)
    n_hw = pl.cdiv(HW, THW)
    need_mask = (HW % THW) != 0

    x3 = x_nchw.reshape(B, C, HW)
    if B_pad != B:
        x3 = jnp.pad(x3, ((0, B_pad - B), (0, 0), (0, 0)))

    # VMEM budget derived from the actual block bytes (double-buffered input +
    # resident/double-buffered output + headroom); stays well under v7x's 64 MiB.
    in_block_bytes = TB * TC * THW * esize
    out_block_bytes = TB * TC * 4
    vmem_limit = int(max(2 * (in_block_bytes + out_block_bytes) + (2 << 20),
                         16 << 20))
    assert 2 * in_block_bytes <= vmem_limit

    pool_cost = pl.CostEstimate(
        flops=int(B_pad * C * HW),
        transcendentals=0,
        bytes_accessed=int(x3.size * esize + B_pad * C * 4),
    )

    pooled = pl.pallas_call(
        functools.partial(_pool_kernel, hw_true=HW, thw=THW,
                          need_mask=need_mask),
        out_shape=jax.ShapeDtypeStruct((B_pad, C), jnp.float32),
        grid_spec=pltpu.PrefetchScalarGridSpec(
            num_scalar_prefetch=0,
            grid=(n_b, n_c, n_hw),
            in_specs=[pl.BlockSpec((TB, TC, THW),
                                   lambda b, c, hw: (b, c, hw))],
            out_specs=pl.BlockSpec((TB, TC), lambda b, c, hw: (b, c)),
        ),
        compiler_params=pltpu.CompilerParams(
            dimension_semantics=("parallel", "parallel", "arbitrary"),
            vmem_limit_bytes=vmem_limit,
        ),
        cost_estimate=pool_cost,
    )(x3)

    # Tiny FC epilogue on the pooled means (whole arrays resident in VMEM).
    # Weights pre-transposed in the wrapper so both matmuls contract without
    # an in-kernel transpose; biases passed as (1, Cr) / (1, C) rows.
    w1t = jnp.transpose(w1).astype(jnp.float32)               # (C, Cr)
    w2t = jnp.transpose(w2).astype(jnp.float32)               # (Cr, C)
    b1r = b1.reshape(1, Cr).astype(jnp.float32)
    b2r = b2.reshape(1, C).astype(jnp.float32)

    weights = pl.pallas_call(
        _fc_kernel,
        out_shape=jax.ShapeDtypeStruct((B_pad, C), jnp.float32),
    )(pooled, w1t, b1r, w2t, b2r)

    return weights[:B].reshape(B, C, 1, 1)


def _reference(x_nchw, w1, b1, w2, b2):
    # Pure-JAX mirror of the PyTorch SEWeightModule forward.
    x_avg = jnp.mean(x_nchw.astype(jnp.float32), axis=(2, 3))   # (B, C)
    h = jnp.maximum(x_avg @ w1.T + b1, 0.0)
    y = h @ w2.T + b2
    return jax.nn.sigmoid(y)[:, :, None, None]


if __name__ == "__main__":
    # Small shapes consistent with the module (reduction=16 => C divisible by 16).
    B, C, H, W = 2, 32, 16, 16
    reduction = 16
    Cr = C // reduction

    key = jax.random.PRNGKey(0)
    kx, k1, kb1, k2, kb2 = jax.random.split(key, 5)

    x = jax.random.normal(kx, (B, C, H, W), dtype=jnp.float32)
    # 1x1 conv weights/biases (exact init scheme irrelevant for the check).
    w1 = jax.random.normal(k1, (Cr, C), dtype=jnp.float32) * math.sqrt(2.0 / C)
    b1 = jax.random.normal(kb1, (Cr,), dtype=jnp.float32) * 0.1
    w2 = jax.random.normal(k2, (C, Cr), dtype=jnp.float32) * math.sqrt(2.0 / Cr)
    b2 = jax.random.normal(kb2, (C,), dtype=jnp.float32) * 0.1

    out = se_weight_forward(x, w1, b1, w2, b2)
    out = jax.block_until_ready(out)

    ref = _reference(x, w1, b1, w2, b2)
    assert out.shape == (B, C, 1, 1)
    assert jnp.allclose(out, ref, atol=1e-5, rtol=1e-5), (
        float(jnp.max(jnp.abs(out - ref))))

    print("KERNEL_OK")
</pallas_src>

<mosaic_0001>
module attributes {stable_mosaic.version = 11 : i64} {
  func.func @_pool_kernel(%arg0: i32, %arg1: i32, %arg2: i32, %arg3: memref<2x32x256xf32, #tpu.memory_space<vmem>>, %arg4: memref<2x32xf32, #tpu.memory_space<vmem>>) attributes {dimension_semantics = [#tpu.dimension_semantics<parallel>, #tpu.dimension_semantics<parallel>, #tpu.dimension_semantics<arbitrary>], iteration_bounds = array<i64: 1, 1, 1>, scalar_prefetch = 0 : i64, scratch_operands = 0 : i64, tpu.core_type = #tpu.core_type<tc>, window_params = [{transform_indices = @transform_0, window_bounds = array<i64: 2, 32, 256>}, {transform_indices = @transform_1, window_bounds = array<i64: 2, 32>}]} {
    %c0_i32 = arith.constant 0 : i32
    %0 = arith.cmpi eq, %arg2, %c0_i32 : i32
    %1 = arith.extui %0 : i1 to i32
    %c0_i32_0 = arith.constant 0 : i32
    %2 = arith.cmpi ne, %1, %c0_i32_0 : i32
    scf.if %2 {
      %cst_9 = arith.constant 0.000000e+00 : f32
      %11 = vector.broadcast %cst_9 : f32 to vector<2x32xf32>
      %c0_10 = arith.constant 0 : index
      %c0_11 = arith.constant 0 : index
      %12 = vector.load %arg4[%c0_10, %c0_11] : memref<2x32xf32, #tpu.memory_space<vmem>>, vector<2x32xf32>
      tpu.vector_store %arg4[%c0_10, %c0_11], %11 {strides = array<i32>} : memref<2x32xf32, #tpu.memory_space<vmem>>, vector<2x32xf32>,
    } else {
    }
    %c0 = arith.constant 0 : index
    %c0_1 = arith.constant 0 : index
    %c0_2 = arith.constant 0 : index
    %3 = vector.load %arg3[%c0, %c0_1, %c0_2] : memref<2x32x256xf32, #tpu.memory_space<vmem>>, vector<2x32x256xf32>
    %c0_3 = arith.constant 0 : index
    %c0_4 = arith.constant 0 : index
    %4 = vector.load %arg4[%c0_3, %c0_4] : memref<2x32xf32, #tpu.memory_space<vmem>>, vector<2x32xf32>
    %cst = arith.constant dense<0.000000e+00> : vector<2x32xf32>
    %5 = vector.multi_reduction <add>, %3, %cst [2] : vector<2x32x256xf32> to vector<2x32xf32>
    %6 = arith.addf %4, %5 : vector<2x32xf32>
    %c0_5 = arith.constant 0 : index
    %c0_6 = arith.constant 0 : index
    %7 = vector.load %arg4[%c0_5, %c0_6] : memref<2x32xf32, #tpu.memory_space<vmem>>, vector<2x32xf32>
    tpu.vector_store %arg4[%c0_5, %c0_6], %6 {strides = array<i32>} : memref<2x32xf32, #tpu.memory_space<vmem>>, vector<2x32xf32>,
    %c0_i32_7 = arith.constant 0 : i32
    %8 = arith.cmpi eq, %arg2, %c0_i32_7 : i32
    %9 = arith.extui %8 : i1 to i32
    %c0_i32_8 = arith.constant 0 : i32
    %10 = arith.cmpi ne, %9, %c0_i32_8 : i32
    scf.if %10 {
      %c0_9 = arith.constant 0 : index
      %c0_10 = arith.constant 0 : index
      %11 = vector.load %arg4[%c0_9, %c0_10] : memref<2x32xf32, #tpu.memory_space<vmem>>, vector<2x32xf32>
      %cst_11 = arith.constant 3.906250e-03 : f32
      %12 = vector.broadcast %cst_11 : f32 to vector<2x32xf32>
      %13 = arith.mulf %11, %12 : vector<2x32xf32>
      %c0_12 = arith.constant 0 : index
      %c0_13 = arith.constant 0 : index
      %14 = vector.load %arg4[%c0_12, %c0_13] : memref<2x32xf32, #tpu.memory_space<vmem>>, vector<2x32xf32>
      tpu.vector_store %arg4[%c0_12, %c0_13], %13 {strides = array<i32>} : memref<2x32xf32, #tpu.memory_space<vmem>>, vector<2x32xf32>,
    } else {
    }
    return
  }
  func.func @transform_0(%arg0: i32, %arg1: i32, %arg2: i32) -> (i32, i32, i32) {
    %c0_i32 = arith.constant 0 : i32
    return %arg0, %arg1, %arg2 : i32, i32, i32
  }
  func.func @transform_1(%arg0: i32, %arg1: i32, %arg2: i32) -> (i32, i32) {
    %c0_i32 = arith.constant 0 : i32
    return %arg0, %arg1 : i32, i32
  }
}

</mosaic_0001>

<bundles_post_ra>
// kernel: tpu_custom_call.1
= control target key start
LH: loop header
LB: loop body
LE: loop exit
PB: predicated region body
PF: predicated region fallthrough
CT: control target
= control target key end

     0   :  { %6 = vsyncpa [#allocation3], 0  ;;  %s246_s0 = inlined_call_operand.hbm [shape: f32[2,32,256], index: 0, kind: input, shape index: {}]   ;;  %s247_s1 = inlined_call_operand.hbm [shape: f32[2,32], index: 1, kind: output, shape index: {}]  }
   0x1   :  { %7 = vsyncpa [#allocation4], 0  ;;  %s204_s6 = smov [#allocation2]   ;;  %s156_s10 = scalar_lea.hbm %s246_s0, 2048 }
   0x2   :  { %s13_s7 = sshll.u32 %s204_s6, 4  ;;  %p157_p0 = scmp.ne.s32.totalorder %s246_s0, %s156_s10  ;;  %s14_s7 = int_to_ptr.vmem [resolvable:$true] %s13_s7 }
   0x3   :  { %p160_p1 = scmp.lt.u32.totalorder %s156_s10, %s246_s0 }
   0x5   :  { %p162_p2 = pnand %p160_p1, %p157_p0 }
   0x7   :  { %165 = shalt.err (!%p162_p2)
}
   0x8   :  { %s166_s15 = scalar_lea.vmem %s14_s7, 2048  ;;  %p171_p4 = scmp.lt.s32.totalorder %s14_s7, %s14_s7 }
   0x9   :  { %p167_p3 = scmp.ne.s32.totalorder %s14_s7, %s166_s15  ;;  %p172_p5 = scmp.lt.s32.totalorder %s166_s15, %s166_s15 }
   0xb   :  { %p173_p6 = por %p172_p5, %p171_p4 }
   0xd   :  { %p174_p7 = pnand %p173_p6, %p167_p3 }
   0xf   :  { %177 = shalt.err (!%p174_p7)
}
  0x10   :  { %s205_s16 = smov 256   ;;  %s206_s17 = smov 16  }
  0x11   :  { %19 = dma.hbm_to_vmem [thread:$0]  %s246_s0, 2048, %s14_s7, [#allocation3], %s205_s16, %s205_s16, %s206_s17  }
  0x12   :  { %200 = dma.done.wait [#allocation3], 2048  }
  0x13   :  { %201 = vsyncadd [#allocation3], 4294965248  ;;  %v37_v0 = vld [vmem:[#allocation2 + $0x40] sm:$0xff]  ;;  %v38_v1 = vld [vmem:[#allocation2 + $0x48] sm:$0xff]  ;;  %vm27_vm0 = vcmask 254976   ;;  %v207_v24 = vmov 0.0   ;;  %v78_v25 = vlaneseq }
  0x14   :  { %v29_v2 = vld [vmem:[#allocation2] sm:$0xff]  ;;  %v58_v3 = vadd.f32 %v38_v1, %v37_v0  ;;  %v30_v4 = vld [vmem:[#allocation2 + $0x8] sm:$0xff]  ;;  %v39_v5 = vld [vmem:[#allocation2 + $0x50] sm:$0xff]  ;;  %28 = vst.msk [vmem:[#allocation5] sm:$0x3] %vm27_vm0, %v207_v24  ;;  %vm89_vm1 = vcmask 130112  }
  0x15   :  { %v40_v6 = vld [vmem:[#allocation2 + $0x58] sm:$0xff]  ;;  %v46_v7 = vadd.f32 %v30_v4, %v29_v2  ;;  %v31_v8 = vld [vmem:[#allocation2 + $0x10] sm:$0xff]  ;;  %v41_v12 = vld [vmem:[#allocation2 + $0x60] sm:$0xff]  ;;  %v79_v26 = vand.u32 127, %v78_v25  ;;  %v81_v31 = vshrl.u32 %v78_v25, 7  ;;  %vm96_vm2 = vcmask 195712  }
  0x16   :  { %v32_v9 = vld [vmem:[#allocation2 + $0x18] sm:$0xff]  ;;  %59 = vadd.xlane.f32.xlu1 %v58_v3  ;;  %v61_v10 = vadd.f32 %v40_v6, %v39_v5  ;;  %v42_v13 = vld [vmem:[#allocation2 + $0x68] sm:$0xff]  ;;  %v33_v14 = vld [vmem:[#allocation2 + $0x20] sm:$0xff]  ;;  %vm103_vm3 = vcmask 261312   ;;  %vm124_vm4 = vcmask 1041409   ;;  %s208_s0 = smov [#allocation5]  }
  0x17   :  { %47 = vadd.xlane.f32.xlu0 %v46_v7  ;;  %v49_v11 = vadd.f32 %v32_v9, %v31_v8  ;;  %v34_v15 = vld [vmem:[#allocation2 + $0x28] sm:$0xff]  ;;  %v64_v16 = vadd.f32 %v42_v13, %v41_v12  ;;  %v43_v18 = vld [vmem:[#allocation2 + $0x70] sm:$0xff]  ;;  %v44_v19 = vld [vmem:[#allocation2 + $0x78] sm:$0xff]  ;;  %v84_v29 = vadd.s32 4294967288, %v79_v26  ;;  %v91_v30 = vadd.s32 4294967280, %v79_v26  ;;  %s142_s20 = sshll.u32 %s208_s0, 4  ;;  %s143_s20 = int_to_ptr.vmem [resolvable:$true] %s142_s20 }
  0x18   :  { %v52_v17 = vadd.f32 %v34_v15, %v33_v14  ;;  %v35_v20 = vld [vmem:[#allocation2 + $0x30] sm:$0xff]  ;;  %v36_v21 = vld [vmem:[#allocation2 + $0x38] sm:$0xff]  ;;  %v67_v22 = vadd.f32 %v44_v19, %v43_v18  ;;  %v98_v35 = vadd.s32 4294967272, %v79_v26  ;;  %v82_v37 = vsub.s32 %v79_v26, %v81_v31  ;;  %s178_s21 = scalar_lea.vmem %s143_s20, 32  ;;  %p183_p9 = scmp.lt.s32.totalorder %s143_s20, %s143_s20 }
  0x19   :  { %v55_v23 = vadd.f32 %v36_v21, %v35_v20  ;;  %v87_v33 = vsub.s32 %v84_v29, %v81_v31  ;;  %v94_v36 = vsub.s32 %v91_v30, %v81_v31  ;;  %p179_p8 = scmp.ne.s32.totalorder %s143_s20, %s178_s21  ;;  %p184_p10 = scmp.lt.s32.totalorder %s178_s21, %s178_s21 }
  0x1a   :  { %62 = vadd.xlane.f32.xlu1 %v61_v10  ;;  %v101_v41 = vsub.s32 %v98_v35, %v81_v31 }
  0x1b   :  { %50 = vadd.xlane.f32.xlu0 %v49_v11  ;;  %v45_v56 = vld [vmem:[#allocation5] sm:$0x3]  ;;  %p185_p11 = por %p184_p10, %p183_p9 }
  0x1d   :  { %p186_p12 = pnand %p185_p11, %p179_p8 }
  0x1e   :  { %65 = vadd.xlane.f32.xlu1 %v64_v16 }
  0x1f   :  { %53 = vadd.xlane.f32.xlu0 %v52_v17 }
  0x22   :  { %68 = vadd.xlane.f32.xlu1 %v67_v22 }
  0x23   :  { %56 = vadd.xlane.f32.xlu0 %v55_v23 }
  0xa3   :  { %v60_v27 = vpop.xlane.xlu1 %59 }
  0xa4   :  { %v48_v28 = vpop.xlane.xlu0 %47  ;;  %v108_v44 = vrot.slane %v60_v27, %v82_v37 }
  0xa5   :  { %v83_v46 = vrot.slane %v48_v28, %v82_v37 }
  0xa7   :  { %v63_v32 = vpop.xlane.xlu1 %62 }
  0xa8   :  { %v51_v34 = vpop.xlane.xlu0 %50  ;;  %v112_v39 = vrot.slane %v63_v32, %v87_v33 }
  0xa9   :  { %v88_v42 = vrot.slane %v51_v34, %v87_v33 }
  0xaa   :  { %v113_v48 = vsel %vm89_vm1, %v112_v39, %v108_v44 }
  0xab   :  { %v66_v38 = vpop.xlane.xlu1 %65  ;;  %v90_v51 = vsel %vm89_vm1, %v88_v42, %v83_v46 }
  0xac   :  { %v54_v40 = vpop.xlane.xlu0 %53  ;;  %v117_v43 = vrot.slane %v66_v38, %v94_v36 }
  0xad   :  { %v95_v45 = vrot.slane %v54_v40, %v94_v36 }
  0xae   :  { %v118_v52 = vsel %vm96_vm2, %v117_v43, %v113_v48 }
  0xaf   :  { %v69_v47 = vpop.xlane.xlu1 %68  ;;  %v97_v54 = vsel %vm96_vm2, %v95_v45, %v90_v51 }
  0xb0   :  { %v122_v49 = vrot.slane %v69_v47, %v101_v41  ;;  %v57_v50 = vpop.xlane.xlu0 %56 }
  0xb1   :  { %v102_v53 = vrot.slane %v57_v50, %v101_v41 }
  0xb2   :  { %v123_v55 = vsel %vm103_vm3, %v122_v49, %v118_v52 }
  0xb3   :  { %v104_v57 = vsel %vm103_vm3, %v102_v53, %v97_v54 }
  0xb4   :  { %v125_v58 = vsel %vm124_vm4, %v123_v55, %v104_v57 }
  0xb5   :  { %v127_v59 = vadd.f32 %v125_v58, %v45_v56 }
  0xb7   :  { %129 = vst.msk [vmem:[#allocation5] sm:$0x3] %vm27_vm0, %v127_v59 }
  0xbe   :  { %v133_v60 = vld [vmem:[#allocation5] sm:$0x3] }
  0xbf   :  { %v134_v61 = vmul.f32 0.00390625, %v133_v60 }
  0xc1   :  { %135 = vst.msk [vmem:[#allocation5] sm:$0x3] %vm27_vm0, %v134_v61 }
  0xc2   :  { %189 = shalt.err (!%p186_p12)
}
  0xc3   :  { %s190_s24 = scalar_lea.hbm %s247_s1, 32 }
  0xc4   :  { %p191_p13 = scmp.ne.s32.totalorder %s247_s1, %s190_s24  ;;  %p194_p0 = scmp.lt.u32.totalorder %s190_s24, %s247_s1 }
  0xc6   :  { %p196_p1 = pnand %p194_p0, %p191_p13 }
  0xc8   :  { %199 = shalt.err (!%p196_p1)
}
  0xc9   :  { %145 = dma.vmem_to_hbm [thread:$0]  %s143_s20, 32, %s247_s1, [#allocation4]  }
  0xca   :  { %202 = dma.done.wait [#allocation4], 32  }
  0xcb   :  { %203 = vsyncadd [#allocation4], 4294967264 }
  0xcc   :  { %149 = vsyncpa [#allocation3], 1 }
  0xcd   :  { %150 = vsyncpa [#allocation4], 1 }

</bundles_post_ra>
